<compile_context>
chip_gen: v5e
topology: v5e:2x2
jax: 0.10.0
libtpu: 0.0.40
codegen_flags: <defaults>
</compile_context>

<pallas_src>
import math

import jax
import jax.numpy as jnp
from jax.experimental import pallas as pl
from jax.experimental.pallas import tpu as pltpu


def _round_up(x: int, m: int) -> int:
    return ((x + m - 1) // m) * m


def _largest_divisor_tile(full: int, cap: int, step: int = 128) -> int:
    """Largest multiple of `step` that is <= cap and divides `full` (full % step == 0)."""
    if full <= cap:
        return full
    t = max(step, (cap // step) * step)
    while t > step and full % t != 0:
        t -= step
    return t


# ---------------------------------------------------------------------------
# Kernels (canonical (tm,tk) @ (tk,tn) MXU feed; weight already transposed)
# ---------------------------------------------------------------------------

def _linear_kernel_f32out(x_ref, w_ref, b_ref, o_ref):
    """f32 output: accumulate straight into the output block (index_map ignores k),
    so it stays VMEM-resident across the K axis; bias seeds the accumulator."""
    @pl.when(pl.program_id(2) == 0)
    def _():
        o_ref[...] = jnp.broadcast_to(b_ref[...].astype(jnp.float32), o_ref.shape)

    o_ref[...] += jnp.dot(x_ref[...], w_ref[...],
                          preferred_element_type=jnp.float32)


def _linear_kernel_acc(x_ref, w_ref, b_ref, o_ref, acc_ref):
    """Low-precision output (e.g. bf16): f32 scratch accumulator + epilogue cast."""
    @pl.when(pl.program_id(2) == 0)
    def _():
        acc_ref[...] = jnp.zeros_like(acc_ref)

    acc_ref[...] += jnp.dot(x_ref[...], w_ref[...],
                            preferred_element_type=jnp.float32)

    @pl.when(pl.program_id(2) == pl.num_programs(2) - 1)
    def _():
        o_ref[...] = (acc_ref[...] + b_ref[...].astype(jnp.float32)).astype(o_ref.dtype)


# ---------------------------------------------------------------------------
# One-time parameter preparation (amortized across all forward calls)
# ---------------------------------------------------------------------------

def prepare_linear_norm(weight, bias=None):
    """Pre-transpose weight to (in_dim, out_dim) and pre-pad K/N to multiples of 128.

    weight: (out_dim, in_dim) torch layout; bias: (out_dim,) or None.
    Returns a dict of cached, kernel-ready parameters.
    """
    out_dim, in_dim = weight.shape
    k_pad = _round_up(in_dim, 128)
    n_pad = _round_up(out_dim, 128)

    w_t = weight.T  # (in_dim, out_dim): canonical MK x KN feed, no in-kernel transpose
    if (k_pad, n_pad) != (in_dim, out_dim):
        w_t = jnp.pad(w_t, ((0, k_pad - in_dim), (0, n_pad - out_dim)))

    if bias is None:
        b2d = jnp.zeros((1, n_pad), dtype=weight.dtype)
    else:
        b2d = bias.reshape(1, out_dim)
        if n_pad != out_dim:
            b2d = jnp.pad(b2d, ((0, 0), (0, n_pad - out_dim)))

    return {"w_t": w_t, "b": b2d, "in_dim": in_dim, "out_dim": out_dim}


# ---------------------------------------------------------------------------
# Forward
# ---------------------------------------------------------------------------

def linear_norm_forward(x, params, *,
                        block_m: int = 512, block_n: int = 512, block_k: int = 1024,
                        use_pallas=None):
    """y = x @ W^T + b (torch.nn.Linear semantics), using pre-prepared params."""
    in_dim = params["in_dim"]
    out_dim = params["out_dim"]
    w_t = params["w_t"]            # (K_pad, N_pad), pre-transposed & pre-padded
    b2d = params["b"]              # (1, N_pad)
    k_pad, n_pad = w_t.shape

    lead_shape = x.shape[:-1]
    M = int(math.prod(lead_shape)) if lead_shape else 1
    x2d = x.reshape(M, in_dim)
    if k_pad != in_dim:
        x2d = jnp.pad(x2d, ((0, 0), (0, k_pad - in_dim)))  # zero K-pad: no effect on sum

    out_dtype = jnp.dtype(x.dtype)

    # Tiny problems: launch/pad overhead exceeds the work; let XLA fuse a plain dot.
    if use_pallas is None:
        use_pallas = (2 * M * in_dim * out_dim) >= (1 << 22)
    if not use_pallas:
        y = jnp.dot(x2d, w_t, preferred_element_type=jnp.float32)
        y = (y + b2d.astype(jnp.float32)).astype(out_dtype)
        return y[:, :out_dim].reshape(*lead_shape, out_dim)

    # ---- tile selection -----------------------------------------------------
    itemsize = out_dtype.itemsize
    sub = max(8, 32 // itemsize)                      # sublane multiple (8 f32, 16 bf16)

    tn = _largest_divisor_tile(n_pad, block_n)        # multiple of 128, divides N_pad
    tk = _largest_divisor_tile(k_pad, block_k)        # multiple of 128, divides K_pad

    nm = max(1, -(-M // block_m))                     # number of M tiles (balanced)
    tm = _round_up(-(-M // nm), sub)
    m_pad = _round_up(M, tm)
    grid_m = m_pad // tm
    grid_n = n_pad // tn

    # v7x has 2 TensorCores: make sure there are >= 2 blocks along a parallel axis.
    if grid_m * grid_n == 1 and tm >= 2 * sub:
        tm = _round_up(-(-tm // 2), sub)
        m_pad = _round_up(M, tm)
        grid_m = m_pad // tm

    if m_pad != M:
        x2d = jnp.pad(x2d, ((0, m_pad - M), (0, 0)))

    grid = (grid_m, grid_n, k_pad // tk)

    # ---- explicit VMEM budget (double-buffered tiles + accumulator) ----------
    direct_f32 = (out_dtype == jnp.dtype(jnp.float32))
    w_item = jnp.dtype(w_t.dtype).itemsize
    needed = (2 * tm * tk * itemsize          # x tiles (double-buffered)
              + 2 * tk * tn * w_item          # weight tiles
              + 2 * tm * tn * itemsize        # output tiles
              + 2 * tn * w_item               # bias tiles
              + (0 if direct_f32 else tm * tn * 4))
    vmem_limit = min(96 << 20, max(16 << 20, int(needed * 1.5) + (4 << 20)))

    kernel = _linear_kernel_f32out if direct_f32 else _linear_kernel_acc
    scratch = [] if direct_f32 else [pltpu.VMEM((tm, tn), jnp.float32)]

    out2d = pl.pallas_call(
        kernel,
        out_shape=jax.ShapeDtypeStruct((m_pad, n_pad), out_dtype),
        grid_spec=pltpu.PrefetchScalarGridSpec(
            num_scalar_prefetch=0,
            grid=grid,
            in_specs=[
                pl.BlockSpec((tm, tk), lambda i, j, k: (i, k)),   # x tile
                pl.BlockSpec((tk, tn), lambda i, j, k: (k, j)),   # W^T tile (canonical)
                pl.BlockSpec((1, tn), lambda i, j, k: (0, j)),    # bias tile
            ],
            out_specs=pl.BlockSpec((tm, tn), lambda i, j, k: (i, j)),
            scratch_shapes=scratch,
        ),
        compiler_params=pltpu.CompilerParams(
            dimension_semantics=("parallel", "parallel", "arbitrary"),
            vmem_limit_bytes=vmem_limit),
    )(x2d, w_t, b2d)

    if m_pad != M or n_pad != out_dim:
        out2d = out2d[:M, :out_dim]
    return out2d.reshape(*lead_shape, out_dim)


# ---------------------------------------------------------------------------
# Init matching LinearNorm.__init__
# ---------------------------------------------------------------------------

def init_linear_norm_params(key, in_dim, out_dim, w_init_gain="linear", dtype=jnp.float32):
    """xavier_uniform_ weight (calculate_gain('linear') == 1.0) +
    default torch.nn.Linear bias init U(-1/sqrt(in_dim), 1/sqrt(in_dim))."""
    kw, kb = jax.random.split(key)
    gain = 1.0
    limit = gain * math.sqrt(6.0 / (in_dim + out_dim))
    weight = jax.random.uniform(kw, (out_dim, in_dim), dtype, -limit, limit)
    b_bound = 1.0 / math.sqrt(in_dim)
    bias = jax.random.uniform(kb, (out_dim,), dtype, -b_bound, b_bound)
    return weight, bias


if __name__ == "__main__":
    key = jax.random.PRNGKey(0)
    k_x, k_p, k_x2, k_p2, k_x3, k_p3 = jax.random.split(key, 6)

    # --- small demo shape (forces the Pallas path explicitly) ----------------
    batch, seq, in_dim, out_dim = 2, 8, 32, 64
    x = jax.random.normal(k_x, (batch, seq, in_dim), dtype=jnp.float32)
    weight, bias = init_linear_norm_params(k_p, in_dim, out_dim)
    params = prepare_linear_norm(weight, bias)

    y = linear_norm_forward(x, params, use_pallas=True)
    y = jax.block_until_ready(y)
    y_ref = x @ weight.T + bias
    assert y.shape == (batch, seq, out_dim)
    assert jnp.allclose(y, y_ref, atol=1e-5, rtol=1e-5)

    # --- non-aligned shape: exercises M/N/K padding + tile balancing ---------
    b2, s2, d_in2, d_out2 = 3, 100, 384, 200
    x2 = jax.random.normal(k_x2, (b2, s2, d_in2), dtype=jnp.float32)
    w2, bias2 = init_linear_norm_params(k_p2, d_in2, d_out2)
    params2 = prepare_linear_norm(w2, bias2)
    y2 = linear_norm_forward(x2, params2, use_pallas=True)
    y2 = jax.block_until_ready(y2)
    y2_ref = x2 @ w2.T + bias2
    assert y2.shape == (b2, s2, d_out2)
    assert jnp.allclose(y2, y2_ref, atol=1e-4, rtol=1e-4)

    # --- bf16 path: exercises the f32-scratch accumulator kernel -------------
    b3, s3, d_in3, d_out3 = 4, 64, 256, 256
    x3 = jax.random.normal(k_x3, (b3, s3, d_in3), dtype=jnp.float32).astype(jnp.bfloat16)
    w3, bias3 = init_linear_norm_params(k_p3, d_in3, d_out3, dtype=jnp.float32)
    w3, bias3 = w3.astype(jnp.bfloat16), bias3.astype(jnp.bfloat16)
    params3 = prepare_linear_norm(w3, bias3)
    y3 = linear_norm_forward(x3, params3, use_pallas=True)
    y3 = jax.block_until_ready(y3)
    y3_ref = (x3.astype(jnp.float32) @ w3.T.astype(jnp.float32)
              + bias3.astype(jnp.float32))
    assert y3.shape == (b3, s3, d_out3)
    assert jnp.allclose(y3.astype(jnp.float32), y3_ref, atol=5e-2, rtol=5e-2)

    print("KERNEL_OK")
</pallas_src>

<mosaic_0001>
module attributes {stable_mosaic.version = 11 : i64} {
  func.func @_linear_kernel_f32out(%arg0: i32, %arg1: i32, %arg2: i32, %arg3: memref<8x128xf32, #tpu.memory_space<vmem>>, %arg4: memref<128x128xf32, #tpu.memory_space<vmem>>, %arg5: memref<1x128xf32, #tpu.memory_space<vmem>>, %arg6: memref<8x128xf32, #tpu.memory_space<vmem>>) attributes {dimension_semantics = [#tpu.dimension_semantics<parallel>, #tpu.dimension_semantics<parallel>, #tpu.dimension_semantics<arbitrary>], iteration_bounds = array<i64: 2, 1, 1>, scalar_prefetch = 0 : i64, scratch_operands = 0 : i64, tpu.core_type = #tpu.core_type<tc>, window_params = [{transform_indices = @transform_0, window_bounds = array<i64: 8, 128>}, {transform_indices = @transform_1, window_bounds = array<i64: 128, 128>}, {transform_indices = @transform_2, window_bounds = array<i64: 1, 128>}, {transform_indices = @transform_3, window_bounds = array<i64: 8, 128>}]} {
    %c0_i32 = arith.constant 0 : i32
    %0 = arith.cmpi eq, %arg2, %c0_i32 : i32
    %1 = arith.extui %0 : i1 to i32
    %c0_i32_0 = arith.constant 0 : i32
    %2 = arith.cmpi ne, %1, %c0_i32_0 : i32
    scf.if %2 {
      %c0_8 = arith.constant 0 : index
      %c0_9 = arith.constant 0 : index
      %9 = vector.load %arg5[%c0_8, %c0_9] : memref<1x128xf32, #tpu.memory_space<vmem>>, vector<1x128xf32>
      %10 = vector.shape_cast %9 : vector<1x128xf32> to vector<1x128xf32>
      %11 = vector.broadcast %10 : vector<1x128xf32> to vector<8x128xf32>
      %c0_10 = arith.constant 0 : index
      %c0_11 = arith.constant 0 : index
      %12 = vector.load %arg6[%c0_10, %c0_11] : memref<8x128xf32, #tpu.memory_space<vmem>>, vector<8x128xf32>
      tpu.vector_store %arg6[%c0_10, %c0_11], %11 {strides = array<i32>} : memref<8x128xf32, #tpu.memory_space<vmem>>, vector<8x128xf32>,
    } else {
    }
    %c0 = arith.constant 0 : index
    %c0_1 = arith.constant 0 : index
    %3 = vector.load %arg6[%c0, %c0_1] : memref<8x128xf32, #tpu.memory_space<vmem>>, vector<8x128xf32>
    %c0_2 = arith.constant 0 : index
    %c0_3 = arith.constant 0 : index
    %4 = vector.load %arg3[%c0_2, %c0_3] : memref<8x128xf32, #tpu.memory_space<vmem>>, vector<8x128xf32>
    %c0_4 = arith.constant 0 : index
    %c0_5 = arith.constant 0 : index
    %5 = vector.load %arg4[%c0_4, %c0_5] : memref<128x128xf32, #tpu.memory_space<vmem>>, vector<128x128xf32>
    %cst = arith.constant dense<0.000000e+00> : vector<8x128xf32>
    %6 = tpu.matmul %4, %5, %cst {dimension_numbers = #tpu.dot_dimension_numbers<[1], [0], [0], [1], [0, 0, 1, 1], [], []>} : vector<8x128xf32>, vector<128x128xf32>, vector<8x128xf32> -> vector<8x128xf32>
    %7 = arith.addf %3, %6 : vector<8x128xf32>
    %c0_6 = arith.constant 0 : index
    %c0_7 = arith.constant 0 : index
    %8 = vector.load %arg6[%c0_6, %c0_7] : memref<8x128xf32, #tpu.memory_space<vmem>>, vector<8x128xf32>
    tpu.vector_store %arg6[%c0_6, %c0_7], %7 {strides = array<i32>} : memref<8x128xf32, #tpu.memory_space<vmem>>, vector<8x128xf32>,
    return
  }
  func.func @transform_0(%arg0: i32, %arg1: i32, %arg2: i32) -> (i32, i32) {
    %c0_i32 = arith.constant 0 : i32
    return %arg0, %arg2 : i32, i32
  }
  func.func @transform_1(%arg0: i32, %arg1: i32, %arg2: i32) -> (i32, i32) {
    %c0_i32 = arith.constant 0 : i32
    return %arg2, %arg1 : i32, i32
  }
  func.func @transform_2(%arg0: i32, %arg1: i32, %arg2: i32) -> (i32, i32) {
    %c0_i32 = arith.constant 0 : i32
    %c0_i32_0 = arith.constant 0 : i32
    return %c0_i32, %arg1 : i32, i32
  }
  func.func @transform_3(%arg0: i32, %arg1: i32, %arg2: i32) -> (i32, i32) {
    %c0_i32 = arith.constant 0 : i32
    return %arg0, %arg1 : i32, i32
  }
}

</mosaic_0001>

<bundles_post_ra>
// kernel: tpu_custom_call.1
= control target key start
LH: loop header
LB: loop body
LE: loop exit
PB: predicated region body
PF: predicated region fallthrough
CT: control target
= control target key end

     0   :  { %8 = vsyncpa [#allocation3], 0  ;;  %s846_s0 = inlined_call_operand.hbm [shape: f32[16,128], index: 0, kind: input, shape index: {}]   ;;  %s847_s1 = inlined_call_operand.hbm [shape: f32[128,128], index: 1, kind: input, shape index: {}]   ;;  %s848_s2 = inlined_call_operand.vmem [shape: f32[1,128], index: 2, kind: input, shape index: {}]   ;;  %s849_s3 = inlined_call_operand.hbm [shape: f32[16,128], index: 3, kind: output, shape index: {}]  }
   0x1   :  { %10 = vsyncpa [#allocation3 + $0x1], 0 }
   0x2   :  { %11 = vsyncpa [#allocation6], 0 }
   0x3   :  { %12 = vsyncpa [#allocation4], 0 }
   0x4   :  { %14 = vsyncpa [#allocation4 + $0x1], 0  ;;  %s693_s12 = smov 0   ;;  %s695_s13 = smov 0  }
   0x5   :  { %s697_s14 = smov 0   ;;  %s699_s15 = smov 0  }
   0x6   :  { %s701_s16 = smov 0   ;;  %s703_s17 = smov 0  }
   0x7 LB: > { %s430_s18 = sadd.s32 4294967295, %s668_s17   ;;  %p432_p0 = scmp.ge.s32.totalorder %s668_s17, 1  ;;  %s668_s17 = sphi %s703_s17, %s20_s17   ;;  %s664_s16 = sphi %s701_s16, %s860_s16   ;;  %s660_s15 = sphi %s699_s15, %s859_s15   ;;  %s656_s14 = sphi %s697_s14, %s858_s14   ;;  %s652_s13 = sphi %s695_s13, %s857_s13   ;;  %s648_s12 = sphi %s693_s12, %s856_s12  }
   0x8   : > { %p725_p1 = scmp.eq.s32.totalorder %s430_s18, 0  ;;  %p154_p2 = scmp.lt.s32.totalorder %s668_s17, 3 }
   0x9   : > { %s169_s22 = sshll.u32 %s847_s1, 4  ;;  %s670_s24 = smov [#allocation5]   ;;  %s170_s22 = int_to_ptr.hbm [resolvable:$true] %s169_s22 }
   0xa   : > { %p733_p3 = pnand %p432_p0, %p154_p2  ;;  %s171_s25 = sshll.u32 %s670_s24, 4  ;;  %s172_s25 = int_to_ptr.vmem [resolvable:$true] %s171_s25 }
   0xb   : > { %p435_p6 = scmp.ge.s32.totalorder %s668_s17, 2  ;;  %s671_s26 = smov 128  }
   0xc   : > { %p454_p4 = pneg %p733_p3  ;;  %s672_s27 = smov 8  }
   0xd   : > { %s431_s28 = sadd.s32 4294967294, %s668_s17   ;;  %s39_s29 = sadd.s32 1, %s664_s16 }
   0xe   : > { %p455_p5 = pnand %p454_p4, %p725_p1  ;;  %s48_s30 = sadd.s32 1, %s656_s14 }
   0xf   : > { %p41_p7 = scmp.ge.s32.totalorder %s39_s29, 2  ;;  %p55_p8 = scmp.ne.s32.totalorder %s656_s14, %s652_s13 }
  0x10   : > { %457 = dma.hbm_to_vmem [thread:$0]  (!%p455_p5), %s170_s22, 2048, %s172_s25, [#allocation6], %s671_s26, %s671_s26, %s672_s27  }
  0x11   : > { %p56_p9 = scmp.eq.s32.totalorder %s668_s17, 0  ;;  %p61_p10 = scmp.ne.s32.totalorder %s652_s13, %s648_s12 }
  0x12   : > { %s862_s29 = smov (%p41_p7, %s39_s29), 0  ;;  %p141_p13 = scmp.eq.s32.totalorder %s430_s18, 1 }
  0x13   : > { %p752_p11 = por %p56_p9, %p55_p8  ;;  %p758_p12 = por %p725_p1, %p61_p10 }
  0x14   : > { %s43_s6 = ssub.s32 %s664_s16, %s862_s29  ;;  %p147_p2 = scmp.eq.s32.totalorder %s431_s28, 1 }
  0x15   : > { %p46_p0 = scmp.eq.s32.totalorder %s43_s6, 0  ;;  %p764_p4 = por %p141_p13, %p55_p8 }
  0x16   : > { %p467_p5 = scmp.lt.s32.totalorder %s668_s17, 2  ;;  %p772_p7 = por %p147_p2, %p61_p10 }
  0x17   : > { %s770_s8 = scalar_select %p46_p0, %s656_s14, %s48_s30  }
  0x18   : > { %s191_s10 = sand.u32 1, %s656_s14   ;;  %s437_s20 = sshll.u32 %s664_s16, 3 }
  0x19   : > { %s436_s11 = sshll.u32 %s191_s10, 3  ;;  %s200_s18 = scalar_lea.hbm %s846_s0, %s437_s20 }
  0x1a   : > { %s195_s24 = scalar_lea.vmem [#allocation2], %s436_s11  ;;  %s202_s26 = sshll.u32 %s200_s18, 4  ;;  %s203_s26 = int_to_ptr.hbm [resolvable:$true] %s202_s26 }
  0x1b   : > { %s204_s25 = sshll.u32 %s195_s24, 4  ;;  %p459_p8 = pnand %p467_p5, %p752_p11  ;;  %s205_s25 = int_to_ptr.vmem [resolvable:$true] %s204_s25 }
  0x1c   : > { %s192_s27 = scalar_lea.sflag [#allocation3], %s191_s10  ;;  %213 = sbr.rel (%p733_p3) target bundleno = 199 (0xc7), region = 32 }
  0x1d   : > { %461 = dma.hbm_to_vmem [thread:$0]  (!%p459_p8), %s203_s26, 128, %s205_s25, %s192_s27  }
  0x1e   : > { %s786_s28 = sand.u32 (!%p733_p3), 1, %s652_s13  }
  0x1f   : > { %s439_s30 = sshll.u32 (!%p733_p3), %s786_s28, 3  ;;  %s216_s6 = scalar_lea.sflag (!%p733_p3), [#allocation3], %s786_s28 }
  0x20   : > { %s792_s11 = scalar_lea.vmem (!%p733_p3), [#allocation2], %s439_s30 }
  0x21   : > { %635 = dma.done.wait (%p758_p12), %s216_s6, 128  }
  0x22   : > { %637 = vsyncadd (%p758_p12), %s216_s6, 4294967168 }
  0x23   : > { %639 = dma.done.wait (%p725_p1), [#allocation6], 2048  }
  0x24   : > { %641 = vsyncadd (%p725_p1), [#allocation6], 4294965248  ;;  %v281_v0 = vld [vmem:[#allocation5 + $0x78] sm:$0xff]  ;;  %v280_v1 = vld [vmem:[#allocation5 + $0x70] sm:$0xff]  ;;  %s443_s19 = sshll.u32 %s660_s15, 3  ;;  %s250_s21 = scalar_lea.vmem [#allocation7], %s439_s30 }
  0x25   : > { %282 = vmatpush.msra.mxu0 %v281_v0  ;;  %v279_v2 = vld [vmem:[#allocation5 + $0x68] sm:$0xff]  ;;  %v278_v3 = vld [vmem:[#allocation5 + $0x60] sm:$0xff]  ;;  %v277_v4 = vld [vmem:[#allocation5 + $0x58] sm:$0xff]  ;;  %s316_s5 = scalar_lea.hbm %s849_s3, %s443_s19  ;;  %s318_s22 = sshll.u32 %s250_s21, 4  ;;  %s319_s22 = int_to_ptr.vmem [resolvable:$true] %s318_s22 }
  0x26   : > { %v276_v5 = vld [vmem:[#allocation5 + $0x50] sm:$0xff]  ;;  %v275_v6 = vld [vmem:[#allocation5 + $0x48] sm:$0xff]  ;;  %v274_v7 = vld [vmem:[#allocation5 + $0x40] sm:$0xff]  ;;  %s320_s18 = sshll.u32 %s316_s5, 4  ;;  %s305_s24 = scalar_lea.sflag [#allocation4], %s786_s28  ;;  %s321_s18 = int_to_ptr.hbm [resolvable:$true] %s320_s18 }
  0x27   : > { %283 = vmatpush.msra.mxu0 %v280_v1  ;;  %v273_v8 = vld [vmem:[#allocation5 + $0x38] sm:$0xff]  ;;  %v272_v9 = vld [vmem:[#allocation5 + $0x30] sm:$0xff]  ;;  %v271_v10 = vld [vmem:[#allocation5 + $0x28] sm:$0xff]  ;;  %s596_s15 = sshra.s32 %s321_s18, 4  ;;  %s602_s6 = scalar_lea.hbm %s849_s3, 16  ;;  %s597_s15 = int_to_ptr.hbm [resolvable:$true] %s596_s15 }
  0x28   : > { %v270_v11 = vld [vmem:[#allocation5 + $0x20] sm:$0xff]  ;;  %v269_v12 = vld [vmem:[#allocation5 + $0x18] sm:$0xff]  ;;  %v268_v13 = vld [vmem:[#allocation5 + $0x10] sm:$0xff]  ;;  %s598_s25 = scalar_lea.hbm %s597_s15, 8  ;;  %p603_p10 = scmp.lt.s32.totalorder %s597_s15, %s849_s3 }
  0x29   : > { %284 = vmatpush.msra.mxu0 %v279_v2  ;;  %v267_v14 = vld [vmem:[#allocation5 + $0x8] sm:$0xff]  ;;  %v266_v15 = vld [vmem:[#allocation5] sm:$0xff]  ;;  %v265_v16 = vld [vmem:[%s792_s11] sm:$0xff]  ;;  %p599_p1 = scmp.ne.s32.totalorder %s597_s15, %s598_s25  ;;  %p604_p11 = scmp.lt.s32.totalorder %s602_s6, %s598_s25 }
  0x2a   : > { %v521_v17 = vld [vmem:[%s848_s2] ss:$0 sm:$0xff] }
  0x2b   : > { %285 = vmatpush.msra.mxu0 %v278_v3  ;;  %p600_p3 = pnand %p599_p1, %p764_p4  ;;  %p605_p12 = por %p604_p11, %p603_p10 }
  0x2d   : > { %286 = vmatpush.msra.mxu0 %v277_v4  ;;  %p601_p9 = pneg %p600_p3 }
  0x2f   : > { %287 = vmatpush.msra.mxu0 %v276_v5  ;;  %p606_p13 = pnand %p605_p12, %p601_p9 }
  0x31   : > { %288 = vmatpush.msra.mxu0 %v275_v6 }
  0x33   : > { %289 = vmatpush.msra.mxu0 %v274_v7 }
  0x35   : > { %290 = vmatpush.msra.mxu0 %v273_v8 }
  0x37   : > { %291 = vmatpush.msra.mxu0 %v272_v9 }
  0x39   : > { %292 = vmatpush.msra.mxu0 %v271_v10 }
  0x3b   : > { %293 = vmatpush.msra.mxu0 %v270_v11 }
  0x3d   : > { %294 = vmatpush.msra.mxu0 %v269_v12 }
  0x3f   : > { %295 = vmatpush.msra.mxu0 %v268_v13 }
  0x41   : > { %296 = vmatpush.msra.mxu0 %v267_v14 }
  0x43   : > { %297 = vmatpush.msra.mxu0 %v266_v15 }
  0x44   : > { %298 = vmatmul.f32.vlgmr.msra.gmra.mxu0 %v265_v16 }
  0xc1   : > { %v299_v18 = vpop.f32.mrf.mxu0 }
  0xc2   : > { %v302_v19 = vadd.f32 %v521_v17, %v299_v18 }
  0xc4   : > { %303 = vst [vmem:[%s250_s21] sm:$0xff] %v302_v19 }
  0xc5   : > { %609 = shalt.err (!%p606_p13)
}
  0xc6   : > { %452 = dma.vmem_to_hbm [thread:$0]  (%p764_p4), %s319_s22, 128, %s321_s18, %s305_s24  }
  0xc7 PF: > { %s332_s28 = sand.u32 1, %s648_s12   ;;  %p463_p0 = pnand %p435_p6, %p772_p7 }
  0xc8   : > { %s333_s19 = scalar_lea.sflag [#allocation4], %s332_s28 }
  0xc9   : > { %p464_p2 = pneg %p463_p0 }
  0xcb   : > { %643 = dma.done.wait (%p464_p2), %s333_s19, 128  }
  0xcc   : > { %645 = vsyncadd (%p464_p2), %s333_s19, 4294967168  ;;  %s20_s17 = sadd.s32 1, %s668_s17   ;;  %s856_s12 = smov %s652_s13 }
  0xcd   : > { %p17_p5 = scmp.ge.s32.totalorder %s20_s17, 4   ;;  %s857_s13 = smov %s656_s14 }
  0xce   : > { %s858_s14 = smov %s770_s8  ;;  %s859_s15 = smov %s664_s16 }
  0xcf   : > { %s860_s16 = smov %s862_s29  ;;  %19 = sbr.rel (!%p17_p5) target bundleno = 7 (0x7), region = 89 }
  0xd4   :  { %339 = vsyncpa [#allocation3], 1 }
  0xd5   :  { %341 = vsyncpa [#allocation3 + $0x1], 1 }
  0xd6   :  { %342 = vsyncpa [#allocation6], 1 }
  0xd7   :  { %343 = vsyncpa [#allocation4], 1 }
  0xd8   :  { %345 = vsyncpa [#allocation4 + $0x1], 1 }

</bundles_post_ra>
